<compile_context>
chip_gen: v7x
topology: tpu7x:2x2x1
jax: 0.10.0
libtpu: 0.0.40
codegen_flags: <defaults>
</compile_context>

<pallas_src>
import functools

import jax
import jax.numpy as jnp
from jax import lax
from jax.experimental import pallas as pl
from jax.experimental.pallas import tpu as pltpu

_LANES = 128
_SUBLANES = 8


def _round_down(a, b):
    return (a // b) * b


def _pu_partial_kernel(x_ref, t_ref, acc_ref, *, eps, chunk, n_tiles):
    """Accumulates 4 partial sums over one (r_blk, 128) tile of scores/labels.

    acc_ref block: (1, 4, 8, 128) f32, resident across the reduction grid axis:
      row 0: count of positives             (t == +1)
      row 1: Σ positive * (-log x)
      row 2: Σ (-log(1 - x))                (over every element of the tile)
      row 3: Σ positive * (-log(1 - x))
    Per-slot counts stay far below 2^24, so f32 accumulation is exact enough here.
    """
    i = pl.program_id(1)

    @pl.when(i == 0)
    def _init():
        acc_ref[...] = jnp.zeros_like(acc_ref)

    r_blk = x_ref.shape[0]
    n_chunks = r_blk // chunk
    rem = r_blk % chunk

    def chunk_sums(row0, nrows):
        x = x_ref[pl.ds(row0, nrows), :].astype(jnp.float32)
        t = t_ref[pl.ds(row0, nrows), :]
        xc = jnp.clip(x, eps, 1.0 - eps)
        pos = (t == 1).astype(jnp.float32)
        y_pos = -jnp.log(xc)
        y_unl = -jnp.log(1.0 - xc)

        def fold(v):
            # (nrows, 128) -> (8, 128): pure vreg-wise VPU adds (nrows % 8 == 0).
            # The expensive cross-lane reduction is deferred to the jnp epilogue.
            return jnp.sum(v.reshape(-1, _SUBLANES, v.shape[-1]), axis=0)

        return (fold(pos), fold(pos * y_pos), fold(y_unl), fold(pos * y_unl))

    # Grid blocks whose (clamped) index duplicates the last real tile contribute 0.
    global_tile = pl.program_id(0) * pl.num_programs(1) + i

    @pl.when(global_tile < n_tiles)
    def _accumulate():
        zero = jnp.zeros((_SUBLANES, _LANES), jnp.float32)
        carry0 = (zero, zero, zero, zero)

        def body(ci, carry):
            row0 = pl.multiple_of(ci * chunk, _SUBLANES)
            s = chunk_sums(row0, chunk)
            return tuple(a + b for a, b in zip(carry, s))

        carry = lax.fori_loop(0, n_chunks, body, carry0)
        if rem > 0:  # static remainder chunk (rem is a multiple of 8)
            s = chunk_sums(n_chunks * chunk, rem)
            carry = tuple(a + b for a, b in zip(carry, s))

        acc_ref[0, 0] += carry[0]
        acc_ref[0, 1] += carry[1]
        acc_ref[0, 2] += carry[2]
        acc_ref[0, 3] += carry[3]


def _partial_sums_jax(x, t, eps):
    """Same 4 partial sums as the kernel, as a single small fused jnp pass."""
    xc = jnp.clip(x.astype(jnp.float32), eps, 1.0 - eps)
    pos = (t == 1).astype(jnp.float32)
    y_pos = -jnp.log(xc)
    y_unl = -jnp.log(1.0 - xc)
    return jnp.stack(
        [pos.sum(), (pos * y_pos).sum(), y_unl.sum(), (pos * y_unl).sum()]
    )


def _combine(sums, n, prior, gamma, beta):
    """Scalar combine; mirrors nnPUSBloss.forward's returned value (x_out)."""
    sum_pos, sum_pos_ypos, sum_yunl, sum_pos_yunl = sums[0], sums[1], sums[2], sums[3]
    n_positive = jnp.maximum(1.0, sum_pos)
    # Standard PU setting: labels are exactly {+1, -1}, hence
    # n_unlabeled = n - n_positive  and  Σ unl*y_unl = Σ y_unl - Σ pos*y_unl.
    n_unlabeled = jnp.maximum(1.0, jnp.float32(n) - sum_pos)
    c_pos = prior / n_positive
    positive_risk = c_pos * sum_pos_ypos
    negative_risk = (sum_yunl - sum_pos_yunl) / n_unlabeled - c_pos * sum_pos_yunl
    objective = positive_risk + negative_risk
    # Data-dependent branch of the original forward (`if negative_risk.item() < -beta`)
    # expressed without a host sync; the returned value is `x_out`.
    return jnp.where(negative_risk < -beta, -gamma * negative_risk, objective).astype(
        jnp.float32
    )


def nnpusb_loss(x, t, *, prior, gamma=1.0, beta=0.0, eps=1e-7,
                r_blk_max=8192, chunk_rows=512, nsplit=2):
    """JAX/Pallas equivalent of nnPUSBloss.forward.

    x: float scores in (0, 1), shape (N,)
    t: labels in {+1 (positive), -1 (unlabeled)}, shape (N,)
    Returns a scalar float32 (the `x_out` of the original forward).
    """
    if not 0.0 < prior < 1.0:
        raise NotImplementedError("The class prior should be in (0, 1)")

    n = x.shape[0]
    rows_valid = n // _LANES  # fully populated 128-lane rows

    r_blk_cap = max(_SUBLANES, _round_down(int(r_blk_max), _SUBLANES))
    r_blk = min(r_blk_cap, _round_down(rows_valid, _SUBLANES))

    # Small-N path: not even one (8, 128) tile of data -> one fused jnp pass.
    if r_blk < _SUBLANES:
        return _combine(_partial_sums_jax(x, t, eps), n, prior, gamma, beta)

    tiles = rows_valid // r_blk
    nsplit_eff = max(1, min(int(nsplit), tiles))
    tiles_per_split = -(-tiles // nsplit_eff)
    chunk = min(max(_SUBLANES, _round_down(int(chunk_rows), _SUBLANES)), r_blk)

    kernel_rows = tiles * r_blk
    kernel_elems = kernel_rows * _LANES

    # 2-D (rows, 128) views of the flat inputs. When n % 128 == 0 this reshape is a
    # free bitcast (no HBM pre-pass). Otherwise a single pad copy to the next full
    # row is unavoidable; the padded row is never read by the kernel.
    rows_padded = -(-n // _LANES)
    pad = rows_padded * _LANES - n
    if pad:
        x2 = jnp.pad(x, (0, pad)).reshape(rows_padded, _LANES)
        t2 = jnp.pad(t, (0, pad)).reshape(rows_padded, _LANES)
    else:
        x2 = x.reshape(rows_padded, _LANES)
        t2 = t.reshape(rows_padded, _LANES)

    kernel = functools.partial(
        _pu_partial_kernel, eps=float(eps), chunk=chunk, n_tiles=tiles)

    def in_map(c, i):
        # Clamp so the rectangular grid never DMAs past the last real tile; the
        # duplicated tile is skipped by the in-kernel pl.when (contributes 0).
        return (jnp.minimum(c * tiles_per_split + i, tiles - 1), 0)

    # Double-buffered x + t tiles plus headroom; 32 MiB fits every generation's
    # scoped-VMEM budget (v5e default is only 16 MiB, so raise it explicitly).
    io_bytes = 2 * r_blk * _LANES * (x2.dtype.itemsize + t2.dtype.itemsize)
    vmem_limit = int(min(112 << 20, max(32 << 20, io_bytes + (8 << 20))))

    partials = pl.pallas_call(
        kernel,
        out_shape=jax.ShapeDtypeStruct((nsplit_eff, 4, _SUBLANES, _LANES), jnp.float32),
        grid=(nsplit_eff, tiles_per_split),
        in_specs=[
            pl.BlockSpec((r_blk, _LANES), in_map),
            pl.BlockSpec((r_blk, _LANES), in_map),
        ],
        out_specs=pl.BlockSpec((1, 4, _SUBLANES, _LANES), lambda c, i: (c, 0, 0, 0)),
        compiler_params=pltpu.CompilerParams(
            # Leading axis is megacore-parallel on v7x; reduction axis last.
            dimension_semantics=("parallel", "arbitrary"),
            vmem_limit_bytes=vmem_limit,
        ),
    )(x2, t2)

    sums = jnp.sum(partials, axis=(0, 2, 3))  # (4,) — tiny cross-lane reduction

    # Elements not covered by full kernel tiles (row remainder + sub-row remainder):
    # one fused jnp pass over fewer than r_blk*128 + 128 elements.
    if kernel_elems < n:
        sums = sums + _partial_sums_jax(x[kernel_elems:], t[kernel_elems:], eps)

    return _combine(sums, n, prior, gamma, beta)


def _reference(x, t, *, prior, gamma=1.0, beta=0.0, eps=1e-7):
    """Line-by-line jnp port of the PyTorch forward (for validation)."""
    x = jnp.clip(x.astype(jnp.float32), eps, 1.0 - eps)
    positive = (t == 1).astype(jnp.float32)
    unlabeled = (t == -1).astype(jnp.float32)
    n_pos = jnp.maximum(1.0, positive.sum())
    n_unl = jnp.maximum(1.0, unlabeled.sum())
    y_pos = -jnp.log(x)
    y_unl = -jnp.log(1.0 - x)
    pos_risk = (prior * positive / n_pos * y_pos).sum()
    neg_risk = ((unlabeled / n_unl - prior * positive / n_pos) * y_unl).sum()
    return jnp.where(neg_risk < -beta, -gamma * neg_risk, pos_risk + neg_risk)


if __name__ == "__main__":
    prior = 0.3
    key = jax.random.PRNGKey(0)

    def make(n, k):
        kx, kt = jax.random.split(k)
        xs = jax.random.uniform(kx, (n,), dtype=jnp.float32, minval=0.01, maxval=0.99)
        ts = jnp.where(jax.random.uniform(kt, (n,)) < 0.3, 1, -1).astype(jnp.int32)
        return xs, ts

    # Three small configurations that together exercise every code path:
    #   1) defaults: zero-copy reshape, single tile, single chunk
    #   2) multi-tile grid with both splits, a clamped duplicate block, a
    #      non-multiple-of-128 input (pad path) and a jnp tail
    #   3) chunked inner fori_loop with a static remainder chunk
    cases = [
        (8192, {}),
        (128 * 58 + 37, dict(r_blk_max=8, nsplit=2)),
        (8192, dict(chunk_rows=24)),
    ]

    keys = jax.random.split(key, len(cases))
    for (n, kw), k in zip(cases, keys):
        x, t = make(n, k)
        fn = jax.jit(functools.partial(nnpusb_loss, prior=prior, **kw))
        out = jax.block_until_ready(fn(x, t))
        ref = jax.block_until_ready(_reference(x, t, prior=prior))
        assert jnp.allclose(out, ref, rtol=1e-4, atol=1e-5), (n, kw, out, ref)

    print("KERNEL_OK")
</pallas_src>

<mosaic_0001>
module attributes {stable_mosaic.version = 11 : i64} {
  func.func @_pu_partial_kernel(%arg0: i32, %arg1: i32, %arg2: memref<64x128xf32, #tpu.memory_space<vmem>>, %arg3: memref<64x128xi32, #tpu.memory_space<vmem>>, %arg4: memref<1x4x8x128xf32, #tpu.memory_space<vmem>>) attributes {dimension_semantics = [#tpu.dimension_semantics<parallel>, #tpu.dimension_semantics<arbitrary>], iteration_bounds = array<i64: 1, 1>, scalar_prefetch = 0 : i64, scratch_operands = 0 : i64, tpu.core_type = #tpu.core_type<tc>, window_params = [{transform_indices = @transform_0, window_bounds = array<i64: 64, 128>}, {transform_indices = @transform_1, window_bounds = array<i64: 64, 128>}, {transform_indices = @transform_2, window_bounds = array<i64: 1, 4, 8, 128>}]} {
    %c0_i32 = arith.constant 0 : i32
    %0 = arith.cmpi eq, %arg1, %c0_i32 : i32
    %1 = arith.extui %0 : i1 to i32
    %c0_i32_0 = arith.constant 0 : i32
    %2 = arith.cmpi ne, %1, %c0_i32_0 : i32
    scf.if %2 {
      %cst = arith.constant 0.000000e+00 : f32
      %8 = vector.broadcast %cst : f32 to vector<1x4x8x128xf32>
      %c0 = arith.constant 0 : index
      %c0_3 = arith.constant 0 : index
      %c0_4 = arith.constant 0 : index
      %c0_5 = arith.constant 0 : index
      %9 = vector.load %arg4[%c0, %c0_3, %c0_4, %c0_5] : memref<1x4x8x128xf32, #tpu.memory_space<vmem>>, vector<1x4x8x128xf32>
      tpu.vector_store %arg4[%c0, %c0_3, %c0_4, %c0_5], %8 {strides = array<i32>} : memref<1x4x8x128xf32, #tpu.memory_space<vmem>>, vector<1x4x8x128xf32>,
    } else {
    }
    %c1_i32 = arith.constant 1 : i32
    %3 = arith.muli %arg0, %c1_i32 : i32
    %4 = arith.addi %3, %arg1 : i32
    %c1_i32_1 = arith.constant 1 : i32
    %5 = arith.cmpi slt, %4, %c1_i32_1 : i32
    %6 = arith.extui %5 : i1 to i32
    %c0_i32_2 = arith.constant 0 : i32
    %7 = arith.cmpi ne, %6, %c0_i32_2 : i32
    scf.if %7 {
      %cst = arith.constant 0.000000e+00 : f32
      %8 = vector.broadcast %cst : f32 to vector<8x128xf32>
      %c0_i32_3 = arith.constant 0 : i32
      %c64_i32 = arith.constant 64 : i32
      %9 = arith.muli %c0_i32_3, %c64_i32 : i32
      %10 = tpu.assume_multiple %9, 8 : i32
      %11 = arith.index_cast %10 : i32 to index
      %c0 = arith.constant 0 : index
      %12 = vector.load %arg2[%11, %c0] : memref<64x128xf32, #tpu.memory_space<vmem>>, vector<64x128xf32>
      %13 = arith.index_cast %10 : i32 to index
      %c0_4 = arith.constant 0 : index
      %14 = vector.load %arg3[%13, %c0_4] : memref<64x128xi32, #tpu.memory_space<vmem>>, vector<64x128xi32>
      %cst_5 = arith.constant 1.000000e-07 : f32
      %cst_6 = arith.constant 0.99999988 : f32
      %15 = vector.broadcast %cst_5 : f32 to vector<64x128xf32>
      %16 = arith.maximumf %15, %12 : vector<64x128xf32>
      %17 = vector.broadcast %cst_6 : f32 to vector<64x128xf32>
      %18 = arith.minimumf %17, %16 : vector<64x128xf32>
      %c1_i32_7 = arith.constant 1 : i32
      %19 = vector.broadcast %c1_i32_7 : i32 to vector<64x128xi32>
      %20 = arith.cmpi eq, %14, %19 : vector<64x128xi32>
      %21 = arith.extui %20 : vector<64x128xi1> to vector<64x128xi32>
      %22 = arith.sitofp %21 : vector<64x128xi32> to vector<64x128xf32>
      %23 = math.log %18 : vector<64x128xf32>
      %cst_8 = arith.constant 0.000000e+00 : f32
      %24 = vector.broadcast %cst_8 : f32 to vector<64x128xf32>
      %25 = arith.subf %24, %23 : vector<64x128xf32>
      %cst_9 = arith.constant 1.000000e+00 : f32
      %26 = vector.broadcast %cst_9 : f32 to vector<64x128xf32>
      %27 = arith.subf %26, %18 : vector<64x128xf32>
      %28 = math.log %27 : vector<64x128xf32>
      %cst_10 = arith.constant 0.000000e+00 : f32
      %29 = vector.broadcast %cst_10 : f32 to vector<64x128xf32>
      %30 = arith.subf %29, %28 : vector<64x128xf32>
      %31 = vector.shape_cast %22 : vector<64x128xf32> to vector<8x8x128xf32>
      %cst_11 = arith.constant dense<0.000000e+00> : vector<8x128xf32>
      %32 = vector.multi_reduction <add>, %31, %cst_11 [0] : vector<8x8x128xf32> to vector<8x128xf32>
      %33 = arith.mulf %22, %25 : vector<64x128xf32>
      %34 = vector.shape_cast %33 : vector<64x128xf32> to vector<8x8x128xf32>
      %cst_12 = arith.constant dense<0.000000e+00> : vector<8x128xf32>
      %35 = vector.multi_reduction <add>, %34, %cst_12 [0] : vector<8x8x128xf32> to vector<8x128xf32>
      %36 = vector.shape_cast %30 : vector<64x128xf32> to vector<8x8x128xf32>
      %cst_13 = arith.constant dense<0.000000e+00> : vector<8x128xf32>
      %37 = vector.multi_reduction <add>, %36, %cst_13 [0] : vector<8x8x128xf32> to vector<8x128xf32>
      %38 = arith.mulf %22, %30 : vector<64x128xf32>
      %39 = vector.shape_cast %38 : vector<64x128xf32> to vector<8x8x128xf32>
      %cst_14 = arith.constant dense<0.000000e+00> : vector<8x128xf32>
      %40 = vector.multi_reduction <add>, %39, %cst_14 [0] : vector<8x8x128xf32> to vector<8x128xf32>
      %41 = arith.addf %8, %32 : vector<8x128xf32>
      %42 = arith.addf %8, %35 : vector<8x128xf32>
      %43 = arith.addf %8, %37 : vector<8x128xf32>
      %44 = arith.addf %8, %40 : vector<8x128xf32>
      %c1_i32_15 = arith.constant 1 : i32
      %c0_16 = arith.constant 0 : index
      %c0_17 = arith.constant 0 : index
      %c0_18 = arith.constant 0 : index
      %c0_19 = arith.constant 0 : index
      %45 = vector.load %arg4[%c0_16, %c0_17, %c0_18, %c0_19] : memref<1x4x8x128xf32, #tpu.memory_space<vmem>>, vector<1x1x8x128xf32>
      %46 = vector.shape_cast %45 : vector<1x1x8x128xf32> to vector<8x128xf32>
      %47 = arith.addf %46, %41 : vector<8x128xf32>
      %c0_20 = arith.constant 0 : index
      %c0_21 = arith.constant 0 : index
      %c0_22 = arith.constant 0 : index
      %c0_23 = arith.constant 0 : index
      %48 = vector.load %arg4[%c0_20, %c0_21, %c0_22, %c0_23] : memref<1x4x8x128xf32, #tpu.memory_space<vmem>>, vector<1x1x8x128xf32>
      %49 = vector.shape_cast %48 : vector<1x1x8x128xf32> to vector<8x128xf32>
      %50 = vector.shape_cast %47 : vector<8x128xf32> to vector<1x1x8x128xf32>
      tpu.vector_store %arg4[%c0_20, %c0_21, %c0_22, %c0_23], %50 {strides = array<i32>} : memref<1x4x8x128xf32, #tpu.memory_space<vmem>>, vector<1x1x8x128xf32>,
      %c0_24 = arith.constant 0 : index
      %c1 = arith.constant 1 : index
      %c0_25 = arith.constant 0 : index
      %c0_26 = arith.constant 0 : index
      %51 = vector.load %arg4[%c0_24, %c1, %c0_25, %c0_26] : memref<1x4x8x128xf32, #tpu.memory_space<vmem>>, vector<1x1x8x128xf32>
      %52 = vector.shape_cast %51 : vector<1x1x8x128xf32> to vector<8x128xf32>
      %53 = arith.addf %52, %42 : vector<8x128xf32>
      %c0_27 = arith.constant 0 : index
      %c1_28 = arith.constant 1 : index
      %c0_29 = arith.constant 0 : index
      %c0_30 = arith.constant 0 : index
      %54 = vector.load %arg4[%c0_27, %c1_28, %c0_29, %c0_30] : memref<1x4x8x128xf32, #tpu.memory_space<vmem>>, vector<1x1x8x128xf32>
      %55 = vector.shape_cast %54 : vector<1x1x8x128xf32> to vector<8x128xf32>
      %56 = vector.shape_cast %53 : vector<8x128xf32> to vector<1x1x8x128xf32>
      tpu.vector_store %arg4[%c0_27, %c1_28, %c0_29, %c0_30], %56 {strides = array<i32>} : memref<1x4x8x128xf32, #tpu.memory_space<vmem>>, vector<1x1x8x128xf32>,
      %c0_31 = arith.constant 0 : index
      %c2 = arith.constant 2 : index
      %c0_32 = arith.constant 0 : index
      %c0_33 = arith.constant 0 : index
      %57 = vector.load %arg4[%c0_31, %c2, %c0_32, %c0_33] : memref<1x4x8x128xf32, #tpu.memory_space<vmem>>, vector<1x1x8x128xf32>
      %58 = vector.shape_cast %57 : vector<1x1x8x128xf32> to vector<8x128xf32>
      %59 = arith.addf %58, %43 : vector<8x128xf32>
      %c0_34 = arith.constant 0 : index
      %c2_35 = arith.constant 2 : index
      %c0_36 = arith.constant 0 : index
      %c0_37 = arith.constant 0 : index
      %60 = vector.load %arg4[%c0_34, %c2_35, %c0_36, %c0_37] : memref<1x4x8x128xf32, #tpu.memory_space<vmem>>, vector<1x1x8x128xf32>
      %61 = vector.shape_cast %60 : vector<1x1x8x128xf32> to vector<8x128xf32>
      %62 = vector.shape_cast %59 : vector<8x128xf32> to vector<1x1x8x128xf32>
      tpu.vector_store %arg4[%c0_34, %c2_35, %c0_36, %c0_37], %62 {strides = array<i32>} : memref<1x4x8x128xf32, #tpu.memory_space<vmem>>, vector<1x1x8x128xf32>,
      %c0_38 = arith.constant 0 : index
      %c3 = arith.constant 3 : index
      %c0_39 = arith.constant 0 : index
      %c0_40 = arith.constant 0 : index
      %63 = vector.load %arg4[%c0_38, %c3, %c0_39, %c0_40] : memref<1x4x8x128xf32, #tpu.memory_space<vmem>>, vector<1x1x8x128xf32>
      %64 = vector.shape_cast %63 : vector<1x1x8x128xf32> to vector<8x128xf32>
      %65 = arith.addf %64, %44 : vector<8x128xf32>
      %c0_41 = arith.constant 0 : index
      %c3_42 = arith.constant 3 : index
      %c0_43 = arith.constant 0 : index
      %c0_44 = arith.constant 0 : index
      %66 = vector.load %arg4[%c0_41, %c3_42, %c0_43, %c0_44] : memref<1x4x8x128xf32, #tpu.memory_space<vmem>>, vector<1x1x8x128xf32>
      %67 = vector.shape_cast %66 : vector<1x1x8x128xf32> to vector<8x128xf32>
      %68 = vector.shape_cast %65 : vector<8x128xf32> to vector<1x1x8x128xf32>
      tpu.vector_store %arg4[%c0_41, %c3_42, %c0_43, %c0_44], %68 {strides = array<i32>} : memref<1x4x8x128xf32, #tpu.memory_space<vmem>>, vector<1x1x8x128xf32>,
    } else {
    }
    return
  }
  func.func @transform_0(%arg0: i32, %arg1: i32) -> (i32, i32) {
    %c1_i32 = arith.constant 1 : i32
    %0 = arith.muli %arg0, %c1_i32 : i32
    %1 = arith.addi %0, %arg1 : i32
    %c0_i32 = arith.constant 0 : i32
    %2 = arith.minsi %1, %c0_i32 : i32
    %c0_i32_0 = arith.constant 0 : i32
    %c0_i32_1 = arith.constant 0 : i32
    return %2, %c0_i32_0 : i32, i32
  }
  func.func @transform_1(%arg0: i32, %arg1: i32) -> (i32, i32) {
    %c1_i32 = arith.constant 1 : i32
    %0 = arith.muli %arg0, %c1_i32 : i32
    %1 = arith.addi %0, %arg1 : i32
    %c0_i32 = arith.constant 0 : i32
    %2 = arith.minsi %1, %c0_i32 : i32
    %c0_i32_0 = arith.constant 0 : i32
    %c0_i32_1 = arith.constant 0 : i32
    return %2, %c0_i32_0 : i32, i32
  }
  func.func @transform_2(%arg0: i32, %arg1: i32) -> (i32, i32, i32, i32) {
    %c0_i32 = arith.constant 0 : i32
    %c0_i32_0 = arith.constant 0 : i32
    %c0_i32_1 = arith.constant 0 : i32
    %c0_i32_2 = arith.constant 0 : i32
    return %arg0, %c0_i32, %c0_i32_0, %c0_i32_1 : i32, i32, i32, i32
  }
}

</mosaic_0001>

<bundles_post_ra>
// kernel: nnpusb_loss.1
= control target key start
LH: loop header
LB: loop body
LE: loop exit
PB: predicated region body
PF: predicated region fallthrough
CT: control target
= control target key end

     0   :  { %7 = vsyncpa [#allocation3], 0  ;;  %s454_s0 = inlined_call_operand.hbm [shape: f32[64,128], index: 0, kind: input, shape index: {}]   ;;  %s455_s1 = inlined_call_operand.hbm [shape: s32[64,128], index: 1, kind: input, shape index: {}]   ;;  %s456_s2 = inlined_call_operand.vmem [shape: f32[1,4,8,128], index: 2, kind: output, shape index: {}]  }
   0x1   :  { %8 = vsyncpa [#allocation5], 0  ;;  %s356_s9 = smov [#allocation2]   ;;  %s308_s13 = scalar_lea.hbm %s454_s0, 1024 }
   0x2   :  { %s20_s10 = sshll.u32 %s356_s9, 4  ;;  %p309_p0 = scmp.ne.s32.totalorder %s454_s0, %s308_s13  ;;  %s21_s10 = int_to_ptr.vmem [resolvable:$true] %s20_s10 }
   0x3   :  { %p312_p1 = scmp.lt.u32.totalorder %s308_s13, %s454_s0 }
   0x5   :  { %p314_p2 = pnand %p312_p1, %p309_p0 }
   0x7   :  { %317 = shalt.err (!%p314_p2)
}
   0x8   :  { %s318_s18 = scalar_lea.vmem %s21_s10, 1024  ;;  %p323_p4 = scmp.lt.s32.totalorder %s21_s10, %s21_s10 }
   0x9   :  { %p319_p3 = scmp.ne.s32.totalorder %s21_s10, %s318_s18  ;;  %p324_p5 = scmp.lt.s32.totalorder %s318_s18, %s318_s18 }
   0xb   :  { %p325_p6 = por %p324_p5, %p323_p4 }
   0xd   :  { %p326_p7 = pnand %p325_p6, %p319_p3 }
   0xf   :  { %329 = shalt.err (!%p326_p7)
}
  0x10   :  { %s357_s19 = smov 128   ;;  %s358_s20 = smov 8  }
  0x11   :  { %26 = dma.hbm_to_vmem [thread:$0]  %s454_s0, 1024, %s21_s10, [#allocation3], %s357_s19, %s357_s19, %s358_s20  }
  0x12   :  { %s359_s23 = smov [#allocation4]   ;;  %s330_s27 = scalar_lea.hbm %s455_s1, 1024 }
  0x13   :  { %s38_s24 = sshll.u32 %s359_s23, 4  ;;  %p331_p8 = scmp.ne.s32.totalorder %s455_s1, %s330_s27  ;;  %s39_s24 = int_to_ptr.vmem [resolvable:$true] %s38_s24 }
  0x14   :  { %p334_p9 = scmp.lt.u32.totalorder %s330_s27, %s455_s1 }
  0x16   :  { %p336_p10 = pnand %p334_p9, %p331_p8 }
  0x18   :  { %339 = shalt.err (!%p336_p10)
}
  0x19   :  { %s340_s4 = scalar_lea.vmem %s39_s24, 1024  ;;  %p345_p12 = scmp.lt.s32.totalorder %s39_s24, %s39_s24 }
  0x1a   :  { %p341_p11 = scmp.ne.s32.totalorder %s39_s24, %s340_s4  ;;  %p346_p13 = scmp.lt.s32.totalorder %s340_s4, %s340_s4 }
  0x1c   :  { %p347_p0 = por %p346_p13, %p345_p12 }
  0x1e   :  { %p348_p1 = pnand %p347_p0, %p341_p11 }
  0x20   :  { %351 = shalt.err (!%p348_p1)
}
  0x21   :  { %44 = dma.hbm_to_vmem [thread:$0]  %s455_s1, 1024, %s39_s24, [#allocation5], %s357_s19, %s357_s19, %s358_s20  }
  0x22   :  { %352 = dma.done.wait [#allocation3], 1024  }
  0x23   :  { %353 = vsyncadd [#allocation3], 4294966272 }
  0x24   :  { %354 = dma.done.wait [#allocation5], 1024  }
  0x25   :  { %355 = vsyncadd [#allocation5], 4294966272  ;;  %v80_v0 = vld [vmem:[#allocation4] sm:$0xff]  ;;  %v81_v1 = vld [vmem:[#allocation4 + $0x8] sm:$0xff]  ;;  %v360_v8 = vmov 0.0  }
  0x26   :  { %v82_v2 = vld [vmem:[#allocation4 + $0x10] sm:$0xff]  ;;  %vm104_vm0 = vcmp.eq.s32.totalorder %v80_v0, 1  ;;  %vm105_vm1 = vcmp.eq.s32.totalorder %v81_v1, 1  ;;  %v83_v3 = vld [vmem:[#allocation4 + $0x18] sm:$0xff]  ;;  %v84_v4 = vld [vmem:[#allocation4 + $0x20] sm:$0xff] }
  0x27   :  { %vm106_vm2 = vcmp.eq.s32.totalorder %v82_v2, 1  ;;  %v72_v5 = vld [vmem:[#allocation2] sm:$0xff]  ;;  %v73_v6 = vld [vmem:[#allocation2 + $0x8] sm:$0xff]  ;;  %v400_v9 = vsel %vm104_vm0, 1.0, %v360_v8  ;;  %v402_v10 = vsel %vm105_vm1, 1.0, %v360_v8  ;;  %v74_v11 = vld [vmem:[#allocation2 + $0x10] sm:$0xff] }
  0x28   :  { %v85_v7 = vld [vmem:[#allocation4 + $0x28] sm:$0xff]  ;;  %v75_v12 = vld [vmem:[#allocation2 + $0x18] sm:$0xff]  ;;  %v86_v13 = vld [vmem:[#allocation4 + $0x30] sm:$0xff]  ;;  %vm107_vm3 = vcmp.eq.s32.totalorder %v83_v3, 1  ;;  %v184_v14 = vadd.f32 %v402_v10, %v400_v9  ;;  %v88_v16 = vmax.f32 %v72_v5, 1e-07 }
  0x29   :  { %v76_v15 = vld [vmem:[#allocation2 + $0x20] sm:$0xff]  ;;  %v406_v17 = vsel %vm106_vm2, 1.0, %v360_v8  ;;  %v77_v18 = vld [vmem:[#allocation2 + $0x28] sm:$0xff]  ;;  %v89_v19 = vmax.f32 %v73_v6, 1e-07  ;;  %vm108_vm4 = vcmp.eq.s32.totalorder %v84_v4, 1 }
  0x2a   :  { %v90_v20 = vmax.f32 %v74_v11, 1e-07  ;;  %vm109_vm5 = vcmp.eq.s32.totalorder %v85_v7, 1  ;;  %v185_v21 = vadd.f32 %v406_v17, %v184_v14  ;;  %v78_v22 = vld [vmem:[#allocation2 + $0x30] sm:$0xff]  ;;  %v91_v23 = vmax.f32 %v75_v12, 1e-07 }
  0x2b   :  { %v409_v24 = vsel %vm107_vm3, 1.0, %v360_v8  ;;  %v79_v25 = vld [vmem:[#allocation2 + $0x38] sm:$0xff]  ;;  %v92_v26 = vmax.f32 %v76_v15, 1e-07  ;;  %v96_v27 = vmin.f32 %v88_v16, 0.9999999 }
  0x2c   :  { %vm110_vm6 = vcmp.eq.s32.totalorder %v86_v13, 1  ;;  %v186_v28 = vadd.f32 %v409_v24, %v185_v21  ;;  %v93_v29 = vmax.f32 %v77_v18, 1e-07  ;;  %v97_v30 = vmin.f32 %v89_v19, 0.9999999  ;;  %v87_v31 = vld [vmem:[#allocation4 + $0x38] sm:$0xff] }
  0x2d   :  { %v412_v32 = vsel %vm108_vm4, 1.0, %v360_v8  ;;  %v94_v33 = vmax.f32 %v78_v22, 1e-07  ;;  %v98_v34 = vmin.f32 %v90_v20, 0.9999999  ;;  %276 = vlog2.f32 %v96_v27 }
  0x2e   :  { %v187_v35 = vadd.f32 %v412_v32, %v186_v28  ;;  %v95_v36 = vmax.f32 %v79_v25, 1e-07  ;;  %v99_v37 = vmin.f32 %v91_v23, 0.9999999  ;;  %278 = vlog2.f32 %v97_v30 }
  0x2f   :  { %v416_v38 = vsel %vm109_vm5, 1.0, %v360_v8  ;;  %v100_v39 = vmin.f32 %v92_v26, 0.9999999  ;;  %280 = vlog2.f32 %v98_v34  ;;  %vm111_vm7 = vcmp.eq.s32.totalorder %v87_v31, 1 }
  0x30   :  { %v188_v40 = vadd.f32 %v416_v38, %v187_v35  ;;  %v101_v41 = vmin.f32 %v93_v29, 0.9999999  ;;  %282 = vlog2.f32 %v99_v37  ;;  %v420_v42 = vsel %vm110_vm6, 1.0, %v360_v8 }
  0x31   :  { %v102_v43 = vmin.f32 %v94_v33, 0.9999999  ;;  %284 = vlog2.f32 %v100_v39  ;;  %v152_v44 = vsub.f32 1.0, %v96_v27  ;;  %v103_v46 = vmin.f32 %v95_v36, 0.9999999 }
  0x32   :  { %v189_v45 = vadd.f32 %v420_v42, %v188_v40  ;;  %286 = vlog2.f32 %v101_v41  ;;  %v153_v47 = vsub.f32 1.0, %v97_v30  ;;  %v423_v48 = vsel %vm111_vm7, 1.0, %v360_v8 }
  0x33   :  { %288 = vlog2.f32 %v102_v43  ;;  %v154_v49 = vsub.f32 1.0, %v98_v34  ;;  %v155_v51 = vsub.f32 1.0, %v99_v37  ;;  %v156_v52 = vsub.f32 1.0, %v100_v39 }
  0x34   :  { %v190_v50 = vadd.f32 %v423_v48, %v189_v45  ;;  %290 = vlog2.f32 %v103_v46  ;;  %v157_v53 = vsub.f32 1.0, %v101_v41  ;;  %v158_v55 = vsub.f32 1.0, %v102_v43 }
  0x35   :  { %292 = vlog2.f32 %v152_v44  ;;  %v159_v58 = vsub.f32 1.0, %v103_v46 }
  0x36   :  { %294 = vlog2.f32 %v153_v47  ;;  %234 = vst [vmem:[%s456_s2] sm:$0xff] %v190_v50 }
  0x37   :  { %v277_v54 = vpop.eup %276  ;;  %296 = vlog2.f32 %v154_v49 }
  0x38   :  { %v279_v56 = vpop.eup %278  ;;  %v129_v57 = vmul.f32 0.6931472, %v277_v54  ;;  %298 = vlog2.f32 %v155_v51 }
  0x39   :  { %v281_v59 = vpop.eup %280  ;;  %v131_v60 = vmul.f32 0.6931472, %v279_v56  ;;  %300 = vlog2.f32 %v156_v52 }
  0x3a   :  { %v283_v61 = vpop.eup %282  ;;  %v133_v62 = vmul.f32 0.6931472, %v281_v59  ;;  %v144_v63 = vsub.f32 0.0, %v129_v57  ;;  %302 = vlog2.f32 %v157_v53 }
  0x3b   :  { %v285_v0 = vpop.eup %284  ;;  %v135_v1 = vmul.f32 0.6931472, %v283_v61  ;;  %v145_v2 = vsub.f32 0.0, %v131_v60  ;;  %304 = vlog2.f32 %v158_v55 }
  0x3c   :  { %v287_v3 = vpop.eup %286  ;;  %v137_v4 = vmul.f32 0.6931472, %v285_v0  ;;  %v146_v5 = vsub.f32 0.0, %v133_v62  ;;  %v191_v6 = vmul.f32 %v400_v9, %v144_v63  ;;  %306 = vlog2.f32 %v159_v58 }
  0x3d   :  { %v289_v7 = vpop.eup %288  ;;  %v139_v8 = vmul.f32 0.6931472, %v287_v3  ;;  %v147_v11 = vsub.f32 0.0, %v135_v1  ;;  %v192_v12 = vmul.f32 %v402_v10, %v145_v2 }
  0x3e   :  { %v291_v13 = vpop.eup %290  ;;  %v141_v14 = vmul.f32 0.6931472, %v289_v7  ;;  %v148_v15 = vsub.f32 0.0, %v137_v4  ;;  %v193_v16 = vmul.f32 %v406_v17, %v146_v5 }
  0x3f   :  { %v293_v18 = vpop.eup %292  ;;  %v143_v19 = vmul.f32 0.6931472, %v291_v13  ;;  %v149_v20 = vsub.f32 0.0, %v139_v8  ;;  %v194_v21 = vmul.f32 %v409_v24, %v147_v11  ;;  %v199_v22 = vadd.f32 %v192_v12, %v191_v6 }
  0x40   :  { %v295_v23 = vpop.eup %294  ;;  %v150_v25 = vsub.f32 0.0, %v141_v14  ;;  %v161_v26 = vmul.f32 0.6931472, %v293_v18  ;;  %v195_v28 = vmul.f32 %v412_v32, %v148_v15 }
  0x41   :  { %v297_v27 = vpop.eup %296  ;;  %v200_v29 = vadd.f32 %v199_v22, %v193_v16  ;;  %v163_v30 = vmul.f32 0.6931472, %v295_v23  ;;  %v151_v33 = vsub.f32 0.0, %v143_v19  ;;  %v196_v37 = vmul.f32 %v416_v38, %v149_v20 }
  0x42   :  { %v299_v31 = vpop.eup %298  ;;  %v165_v34 = vmul.f32 0.6931472, %v297_v27  ;;  %v176_v35 = vsub.f32 0.0, %v161_v26  ;;  %v197_v44 = vmul.f32 %v420_v42, %v150_v25 }
  0x43   :  { %v301_v36 = vpop.eup %300  ;;  %v201_v39 = vadd.f32 %v200_v29, %v194_v21  ;;  %v167_v40 = vmul.f32 0.6931472, %v299_v31  ;;  %v177_v41 = vsub.f32 0.0, %v163_v30  ;;  %v198_v59 = vmul.f32 %v423_v48, %v151_v33 }
  0x44   :  { %v303_v43 = vpop.eup %302  ;;  %v169_v45 = vmul.f32 0.6931472, %v301_v36  ;;  %v178_v46 = vsub.f32 0.0, %v165_v34  ;;  %v213_v47 = vmul.f32 %v400_v9, %v176_v35 }
  0x45   :  { %v305_v49 = vpop.eup %304  ;;  %v202_v50 = vadd.f32 %v201_v39, %v195_v28  ;;  %v171_v51 = vmul.f32 0.6931472, %v303_v43  ;;  %v179_v52 = vsub.f32 0.0, %v167_v40  ;;  %v206_v53 = vadd.f32 %v177_v41, %v176_v35 }
  0x46   :  { %v307_v54 = vpop.eup %306  ;;  %v173_v55 = vmul.f32 0.6931472, %v305_v49  ;;  %v180_v56 = vsub.f32 0.0, %v169_v45  ;;  %v214_v57 = vmul.f32 %v402_v10, %v177_v41  ;;  %v215_v58 = vmul.f32 %v406_v17, %v178_v46 }
  0x47   :  { %v203_v60 = vadd.f32 %v202_v50, %v196_v37  ;;  %v207_v61 = vadd.f32 %v206_v53, %v178_v46  ;;  %v175_v62 = vmul.f32 0.6931472, %v307_v54  ;;  %v181_v63 = vsub.f32 0.0, %v171_v51 }
  0x48   :  { %v216_v9 = vmul.f32 %v409_v24, %v179_v52  ;;  %v221_v0 = vadd.f32 %v214_v57, %v213_v47  ;;  %v182_v3 = vsub.f32 0.0, %v173_v55  ;;  %v217_v4 = vmul.f32 %v412_v32, %v180_v56 }
  0x49   :  { %v204_v1 = vadd.f32 %v203_v60, %v197_v44  ;;  %v208_v2 = vadd.f32 %v207_v61, %v179_v52  ;;  %v183_v10 = vsub.f32 0.0, %v175_v62  ;;  %v218_v17 = vmul.f32 %v416_v38, %v181_v63 }
  0x4a   :  { %v222_v5 = vadd.f32 %v221_v0, %v215_v58  ;;  %v219_v12 = vmul.f32 %v420_v42, %v182_v3 }
  0x4b   :  { %v205_v6 = vadd.f32 %v204_v1, %v198_v59  ;;  %v209_v7 = vadd.f32 %v208_v2, %v180_v56  ;;  %v220_v14 = vmul.f32 %v423_v48, %v183_v10 }
  0x4c   :  { %v223_v8 = vadd.f32 %v222_v5, %v216_v9 }
  0x4d   :  { %v210_v11 = vadd.f32 %v209_v7, %v181_v63  ;;  %266 = vst [vmem:[%s456_s2 + $0x8] sm:$0xff] %v205_v6 }
  0x4e   :  { %v224_v13 = vadd.f32 %v223_v8, %v217_v4 }
  0x4f   :  { %v211_v24 = vadd.f32 %v210_v11, %v182_v3 }
  0x50   :  { %v225_v15 = vadd.f32 %v224_v13, %v218_v17 }
  0x51   :  { %v212_v32 = vadd.f32 %v211_v24, %v183_v10 }
  0x52   :  { %v226_v16 = vadd.f32 %v225_v15, %v219_v12 }
  0x53   :  { %268 = vst [vmem:[%s456_s2 + $0x10] sm:$0xff] %v212_v32 }
  0x54   :  { %v227_v18 = vadd.f32 %v226_v16, %v220_v14 }
  0x56   :  { %270 = vst [vmem:[%s456_s2 + $0x18] sm:$0xff] %v227_v18 }
  0x57   :  { %251 = vsyncpa [#allocation3], 1 }
  0x58   :  { %252 = vsyncpa [#allocation5], 1 }

</bundles_post_ra>
